<compile_context>
chip_gen: v5e
topology: v5e:2x2
jax: 0.10.0
libtpu: 0.0.40
codegen_flags: <defaults>
</compile_context>

<pallas_src>
import functools

import jax
import jax.numpy as jnp
from jax import lax
from jax.experimental import pallas as pl
from jax.experimental.pallas import tpu as pltpu


_LANE = 128
_SUBLANE = 8
_MAX_TILE_ROWS_DENSE = 1024   # lane-dense path: 1024*128*4B = 512 KiB per block
_MAX_TILE_BYTES_2D = 2 << 20  # general path: ~2 MiB per input block


def _round_up(x, m):
    return (x + m - 1) // m * m


def _custom_mse_kernel(out_ref, tgt_ref, sel_ref, loss_ref, acc_ref, *, inv_count):
    """One grid step: accumulate weighted squared error for this tile.

    out_ref / tgt_ref : (T, C) value tiles (VMEM)
    sel_ref           : (T, S) int32, selected lane positions per row (-1 = none)
    loss_ref          : (1, 1) f32 scalar output (SMEM), written on last step only
    acc_ref           : (T, C) f32 VMEM scratch, elementwise partial-sum accumulator
    """
    step = pl.program_id(0)

    @pl.when(step == 0)
    def _init():
        acc_ref[...] = jnp.zeros_like(acc_ref)

    d = out_ref[...].astype(jnp.float32) - tgt_ref[...].astype(jnp.float32)
    sq = d * d

    lane = lax.broadcasted_iota(jnp.int32, sq.shape, 1)
    weight = jnp.ones_like(sq)
    for s in range(sel_ref.shape[1]):                    # static unroll, S is small
        weight = jnp.where(lane == sel_ref[:, s:s + 1], 10.0, weight)

    acc_ref[...] += sq * weight                          # VPU only; no per-step reduce

    @pl.when(step == pl.num_programs(0) - 1)
    def _finalize():
        # Single cross-lane/sublane reduction + single divide per call.
        loss_ref[0, 0] = jnp.sum(acc_ref[...]) * inv_count


def _launch(out2d, tgt2d, sel2d, n_true_elems, tile_rows):
    rows, cols = out2d.shape
    num_tiles = rows // tile_rows
    kernel = functools.partial(
        _custom_mse_kernel, inv_count=float(1.0 / n_true_elems)
    )
    loss = pl.pallas_call(
        kernel,
        out_shape=jax.ShapeDtypeStruct((1, 1), jnp.float32),
        grid=(num_tiles,),
        in_specs=[
            pl.BlockSpec((tile_rows, cols), lambda i: (i, 0)),              # output
            pl.BlockSpec((tile_rows, cols), lambda i: (i, 0)),              # target
            pl.BlockSpec((tile_rows, sel2d.shape[1]), lambda i: (i, 0)),    # selections
        ],
        out_specs=pl.BlockSpec(memory_space=pltpu.SMEM),                    # scalar loss
        scratch_shapes=[pltpu.VMEM((tile_rows, cols), jnp.float32)],        # accumulator
        compiler_params=pltpu.CompilerParams(
            dimension_semantics=("arbitrary",),       # batch axis is a reduction
            vmem_limit_bytes=32 * 1024 * 1024,        # safe on v5e/v6e/v7x
        ),
    )(out2d, tgt2d, sel2d)
    return loss[0, 0]


def custom_mse(output: jax.Array, target: jax.Array, indexes: jax.Array) -> jax.Array:
    """output, target: (B, N) float32/bf16; indexes: (B,) int. Returns scalar f32."""
    B, N = output.shape
    indexes = indexes.astype(jnp.int32)
    n_elems = B * N

    if N <= _LANE and _LANE % N == 0:
        # ---- Lane-dense path: pack 128//N samples per 128-lane row. ----
        S = _LANE // N
        R = pl.cdiv(n_elems, _LANE)
        tile_rows = min(_MAX_TILE_ROWS_DENSE, _round_up(R, _SUBLANE))
        R_pad = _round_up(R, tile_rows)
        B_pad = R_pad * S

        def flat_pad(x):
            flat = x.reshape(-1)
            return jnp.pad(flat, (0, R_pad * _LANE - n_elems)).reshape(R_pad, _LANE)

        out2d = flat_pad(output)
        tgt2d = flat_pad(target)

        # Selected lane of sample b inside its packed row: (b % S) * N + indexes[b].
        idx_pad = jnp.full((B_pad,), -1, dtype=jnp.int32).at[:B].set(indexes)
        in_range = (idx_pad >= 0) & (idx_pad < N)
        slot = jnp.arange(B_pad, dtype=jnp.int32) % S
        sel = jnp.where(in_range, slot * N + idx_pad, -1).reshape(R_pad, S)

        return _launch(out2d, tgt2d, sel, n_elems, tile_rows)

    # ---- General path: one sample per row, N along lanes. ----
    cap = max(_SUBLANE, (_MAX_TILE_BYTES_2D // (4 * N)) // _SUBLANE * _SUBLANE)
    tile_rows = min(cap, _round_up(B, _SUBLANE))
    B_pad = _round_up(B, tile_rows)

    def pad_rows(x):
        return jnp.pad(x, ((0, B_pad - B), (0, 0)))

    out2d = pad_rows(output)
    tgt2d = pad_rows(target)
    sel = jnp.pad(indexes, (0, B_pad - B), constant_values=-1).reshape(B_pad, 1)
    return _launch(out2d, tgt2d, sel, n_elems, tile_rows)


def _reference(output, target, indexes):
    cost = (output - target) ** 2
    b = jnp.arange(output.shape[0])
    cost = cost.at[b, indexes].multiply(10.0)
    return jnp.mean(cost)


if __name__ == "__main__":
    key = jax.random.PRNGKey(0)
    keys = jax.random.split(key, 9)

    cases = [
        (8, 16, keys[0:3]),    # DQN-style: lane-dense path, exactly one packed row
        (13, 16, keys[3:6]),   # lane-dense path with ragged last packed row
        (10, 20, keys[6:9]),   # general path (20 does not divide 128)
    ]
    for B, N, (ka, kb, kc) in cases:
        output = jax.random.normal(ka, (B, N), dtype=jnp.float32)
        target = jax.random.normal(kb, (B, N), dtype=jnp.float32)
        indexes = jax.random.randint(kc, (B,), 0, N, dtype=jnp.int32)

        loss = custom_mse(output, target, indexes)
        jax.block_until_ready(loss)

        ref = _reference(output, target, indexes)
        assert jnp.allclose(loss, ref, rtol=1e-5, atol=1e-5), (B, N, loss, ref)

    print("KERNEL_OK")
</pallas_src>

<mosaic_0001>
module attributes {stable_mosaic.version = 11 : i64} {
  func.func @_custom_mse_kernel(%arg0: i32, %arg1: memref<8x128xf32, #tpu.memory_space<vmem>>, %arg2: memref<8x128xf32, #tpu.memory_space<vmem>>, %arg3: memref<8x8xi32, #tpu.memory_space<vmem>>, %arg4: memref<1x1xf32, #tpu.memory_space<smem>>, %arg5: memref<8x128xf32, #tpu.memory_space<vmem>>) attributes {dimension_semantics = [#tpu.dimension_semantics<arbitrary>], iteration_bounds = array<i64: 1>, scalar_prefetch = 0 : i64, scratch_operands = 1 : i64, tpu.core_type = #tpu.core_type<tc>, window_params = [{transform_indices = @transform_0, window_bounds = array<i64: 8, 128>}, {transform_indices = @transform_1, window_bounds = array<i64: 8, 128>}, {transform_indices = @transform_2, window_bounds = array<i64: 8, 8>}, {transform_indices = @transform_3, window_bounds = array<i64: 1, 1>}]} {
    %c0_i32 = arith.constant 0 : i32
    %0 = arith.cmpi eq, %arg0, %c0_i32 : i32
    %1 = arith.extui %0 : i1 to i32
    %c0_i32_0 = arith.constant 0 : i32
    %2 = arith.cmpi ne, %1, %c0_i32_0 : i32
    scf.if %2 {
      %cst_27 = arith.constant 0.000000e+00 : f32
      %56 = vector.broadcast %cst_27 : f32 to vector<8x128xf32>
      %c0_28 = arith.constant 0 : index
      %c0_29 = arith.constant 0 : index
      %57 = vector.load %arg5[%c0_28, %c0_29] : memref<8x128xf32, #tpu.memory_space<vmem>>, vector<8x128xf32>
      tpu.vector_store %arg5[%c0_28, %c0_29], %56 {strides = array<i32>} : memref<8x128xf32, #tpu.memory_space<vmem>>, vector<8x128xf32>,
    } else {
    }
    %c0 = arith.constant 0 : index
    %c0_1 = arith.constant 0 : index
    %3 = vector.load %arg1[%c0, %c0_1] : memref<8x128xf32, #tpu.memory_space<vmem>>, vector<8x128xf32>
    %c0_2 = arith.constant 0 : index
    %c0_3 = arith.constant 0 : index
    %4 = vector.load %arg2[%c0_2, %c0_3] : memref<8x128xf32, #tpu.memory_space<vmem>>, vector<8x128xf32>
    %5 = arith.subf %3, %4 : vector<8x128xf32>
    %6 = arith.mulf %5, %5 : vector<8x128xf32>
    %7 = tpu.iota {dimensions = array<i32: 1>} : vector<8x128xi32>
    %cst = arith.constant 1.000000e+00 : f32
    %8 = vector.broadcast %cst : f32 to vector<8x128xf32>
    %c0_4 = arith.constant 0 : index
    %c0_5 = arith.constant 0 : index
    %9 = vector.load %arg3[%c0_4, %c0_5] : memref<8x8xi32, #tpu.memory_space<vmem>>, vector<8x1xi32>
    %10 = vector.broadcast %9 : vector<8x1xi32> to vector<8x128xi32>
    %11 = arith.cmpi eq, %7, %10 : vector<8x128xi32>
    %cst_6 = arith.constant 1.000000e+01 : f32
    %12 = vector.broadcast %cst_6 : f32 to vector<8x128xf32>
    %13 = arith.select %11, %12, %8 : vector<8x128xi1>, vector<8x128xf32>
    %c0_7 = arith.constant 0 : index
    %c1 = arith.constant 1 : index
    %14 = vector.load %arg3[%c0_7, %c1] : memref<8x8xi32, #tpu.memory_space<vmem>>, vector<8x1xi32>
    %15 = vector.broadcast %14 : vector<8x1xi32> to vector<8x128xi32>
    %16 = arith.cmpi eq, %7, %15 : vector<8x128xi32>
    %cst_8 = arith.constant 1.000000e+01 : f32
    %17 = vector.broadcast %cst_8 : f32 to vector<8x128xf32>
    %18 = arith.select %16, %17, %13 : vector<8x128xi1>, vector<8x128xf32>
    %c0_9 = arith.constant 0 : index
    %c2 = arith.constant 2 : index
    %19 = vector.load %arg3[%c0_9, %c2] : memref<8x8xi32, #tpu.memory_space<vmem>>, vector<8x1xi32>
    %20 = vector.broadcast %19 : vector<8x1xi32> to vector<8x128xi32>
    %21 = arith.cmpi eq, %7, %20 : vector<8x128xi32>
    %cst_10 = arith.constant 1.000000e+01 : f32
    %22 = vector.broadcast %cst_10 : f32 to vector<8x128xf32>
    %23 = arith.select %21, %22, %18 : vector<8x128xi1>, vector<8x128xf32>
    %c0_11 = arith.constant 0 : index
    %c3 = arith.constant 3 : index
    %24 = vector.load %arg3[%c0_11, %c3] : memref<8x8xi32, #tpu.memory_space<vmem>>, vector<8x1xi32>
    %25 = vector.broadcast %24 : vector<8x1xi32> to vector<8x128xi32>
    %26 = arith.cmpi eq, %7, %25 : vector<8x128xi32>
    %cst_12 = arith.constant 1.000000e+01 : f32
    %27 = vector.broadcast %cst_12 : f32 to vector<8x128xf32>
    %28 = arith.select %26, %27, %23 : vector<8x128xi1>, vector<8x128xf32>
    %c0_13 = arith.constant 0 : index
    %c4 = arith.constant 4 : index
    %29 = vector.load %arg3[%c0_13, %c4] : memref<8x8xi32, #tpu.memory_space<vmem>>, vector<8x1xi32>
    %30 = vector.broadcast %29 : vector<8x1xi32> to vector<8x128xi32>
    %31 = arith.cmpi eq, %7, %30 : vector<8x128xi32>
    %cst_14 = arith.constant 1.000000e+01 : f32
    %32 = vector.broadcast %cst_14 : f32 to vector<8x128xf32>
    %33 = arith.select %31, %32, %28 : vector<8x128xi1>, vector<8x128xf32>
    %c0_15 = arith.constant 0 : index
    %c5 = arith.constant 5 : index
    %34 = vector.load %arg3[%c0_15, %c5] : memref<8x8xi32, #tpu.memory_space<vmem>>, vector<8x1xi32>
    %35 = vector.broadcast %34 : vector<8x1xi32> to vector<8x128xi32>
    %36 = arith.cmpi eq, %7, %35 : vector<8x128xi32>
    %cst_16 = arith.constant 1.000000e+01 : f32
    %37 = vector.broadcast %cst_16 : f32 to vector<8x128xf32>
    %38 = arith.select %36, %37, %33 : vector<8x128xi1>, vector<8x128xf32>
    %c0_17 = arith.constant 0 : index
    %c6 = arith.constant 6 : index
    %39 = vector.load %arg3[%c0_17, %c6] : memref<8x8xi32, #tpu.memory_space<vmem>>, vector<8x1xi32>
    %40 = vector.broadcast %39 : vector<8x1xi32> to vector<8x128xi32>
    %41 = arith.cmpi eq, %7, %40 : vector<8x128xi32>
    %cst_18 = arith.constant 1.000000e+01 : f32
    %42 = vector.broadcast %cst_18 : f32 to vector<8x128xf32>
    %43 = arith.select %41, %42, %38 : vector<8x128xi1>, vector<8x128xf32>
    %c0_19 = arith.constant 0 : index
    %c7 = arith.constant 7 : index
    %44 = vector.load %arg3[%c0_19, %c7] : memref<8x8xi32, #tpu.memory_space<vmem>>, vector<8x1xi32>
    %45 = vector.broadcast %44 : vector<8x1xi32> to vector<8x128xi32>
    %46 = arith.cmpi eq, %7, %45 : vector<8x128xi32>
    %cst_20 = arith.constant 1.000000e+01 : f32
    %47 = vector.broadcast %cst_20 : f32 to vector<8x128xf32>
    %48 = arith.select %46, %47, %43 : vector<8x128xi1>, vector<8x128xf32>
    %c0_21 = arith.constant 0 : index
    %c0_22 = arith.constant 0 : index
    %49 = vector.load %arg5[%c0_21, %c0_22] : memref<8x128xf32, #tpu.memory_space<vmem>>, vector<8x128xf32>
    %50 = arith.mulf %6, %48 : vector<8x128xf32>
    %51 = arith.addf %49, %50 : vector<8x128xf32>
    %c0_23 = arith.constant 0 : index
    %c0_24 = arith.constant 0 : index
    %52 = vector.load %arg5[%c0_23, %c0_24] : memref<8x128xf32, #tpu.memory_space<vmem>>, vector<8x128xf32>
    tpu.vector_store %arg5[%c0_23, %c0_24], %51 {strides = array<i32>} : memref<8x128xf32, #tpu.memory_space<vmem>>, vector<8x128xf32>,
    %c0_i32_25 = arith.constant 0 : i32
    %53 = arith.cmpi eq, %arg0, %c0_i32_25 : i32
    %54 = arith.extui %53 : i1 to i32
    %c0_i32_26 = arith.constant 0 : i32
    %55 = arith.cmpi ne, %54, %c0_i32_26 : i32
    scf.if %55 {
      %c0_27 = arith.constant 0 : index
      %c0_28 = arith.constant 0 : index
      %56 = vector.load %arg5[%c0_27, %c0_28] : memref<8x128xf32, #tpu.memory_space<vmem>>, vector<8x128xf32>
      %57 = vector.shape_cast %56 : vector<8x128xf32> to vector<1x8x128xf32>
      %cst_29 = arith.constant dense<0.000000e+00> : vector<1xf32>
      %58 = vector.multi_reduction <add>, %57, %cst_29 [1, 2] : vector<1x8x128xf32> to vector<1xf32>
      %59 = vector.shape_cast %58 : vector<1xf32> to vector<1x1x1xf32>
      %60 = vector.extract %59[0, 0, 0] : f32 from vector<1x1x1xf32>
      %cst_30 = arith.constant 7.812500e-03 : f32
      %61 = arith.mulf %60, %cst_30 : f32
      %c0_31 = arith.constant 0 : index
      %c0_32 = arith.constant 0 : index
      %62 = memref.load %arg4[%c0_31, %c0_32] : memref<1x1xf32, #tpu.memory_space<smem>>
      memref.store %61, %arg4[%c0_31, %c0_32] : memref<1x1xf32, #tpu.memory_space<smem>>
    } else {
    }
    return
  }
  func.func @transform_0(%arg0: i32) -> (i32, i32) {
    %c0_i32 = arith.constant 0 : i32
    %c0_i32_0 = arith.constant 0 : i32
    return %arg0, %c0_i32 : i32, i32
  }
  func.func @transform_1(%arg0: i32) -> (i32, i32) {
    %c0_i32 = arith.constant 0 : i32
    %c0_i32_0 = arith.constant 0 : i32
    return %arg0, %c0_i32 : i32, i32
  }
  func.func @transform_2(%arg0: i32) -> (i32, i32) {
    %c0_i32 = arith.constant 0 : i32
    %c0_i32_0 = arith.constant 0 : i32
    return %arg0, %c0_i32 : i32, i32
  }
  func.func @transform_3(%arg0: i32) -> (i32, i32) {
    %c0_i32 = arith.constant 0 : i32
    %c0_i32_0 = arith.constant 0 : i32
    %c0_i32_1 = arith.constant 0 : i32
    return %c0_i32, %c0_i32_0 : i32, i32
  }
}

</mosaic_0001>

<bundles_post_ra>
// kernel: tpu_custom_call.1
= control target key start
LH: loop header
LB: loop body
LE: loop exit
PB: predicated region body
PF: predicated region fallthrough
CT: control target
= control target key end

     0   :  { %8 = vsyncpa [#allocation4], 0  ;;  %s304_s0 = inlined_call_operand.hbm [shape: f32[8,128], index: 0, kind: input, shape index: {}]   ;;  %s305_s1 = inlined_call_operand.hbm [shape: f32[8,128], index: 1, kind: input, shape index: {}]   ;;  %s306_s2 = inlined_call_operand.hbm [shape: s32[8,8], index: 2, kind: input, shape index: {}]   ;;  %s307_s3 = inlined_call_operand.hbm [shape: f32[1,1], index: 3, kind: output, shape index: {}]  }
   0x1   :  { %9 = vsyncpa [#allocation7], 0  ;;  %s27_s14 = sshll.u32 %s305_s1, 4  ;;  %s28_s14 = int_to_ptr.hbm [resolvable:$true] %s27_s14 }
   0x2   :  { %10 = vsyncpa [#allocation5], 0  ;;  %s259_s15 = smov [#allocation6]   ;;  %s16_s19 = sshll.u32 %s304_s0, 4  ;;  %s17_s19 = int_to_ptr.hbm [resolvable:$true] %s16_s19 }
   0x3   :  { %s29_s16 = sshll.u32 %s259_s15, 4  ;;  %s260_s20 = smov [#allocation3]   ;;  %s30_s16 = int_to_ptr.vmem [resolvable:$true] %s29_s16 }
   0x4   :  { %32 = dma.hbm_to_vmem [thread:$0]  %s28_s14, 128, %s30_s16, [#allocation7]  }
   0x5   :  { %s18_s21 = sshll.u32 %s260_s20, 4  ;;  %s38_s24 = sshll.u32 %s306_s2, 4  ;;  %s19_s21 = int_to_ptr.vmem [resolvable:$true] %s18_s21  ;;  %s39_s24 = int_to_ptr.hbm [resolvable:$true] %s38_s24 }
   0x6   :  { %21 = dma.hbm_to_vmem [thread:$0]  %s17_s19, 128, %s19_s21, [#allocation4]  }
   0x7   :  { %s261_s1 = smov [#allocation8]  }
   0x8   :  { %s40_s25 = sshll.u32 %s261_s1, 4  ;;  %s41_s25 = int_to_ptr.vmem [resolvable:$true] %s40_s25 }
   0x9   :  { %43 = dma.hbm_to_vmem [thread:$0]  %s39_s24, 128, %s41_s25, [#allocation7]  }
   0xa   :  { %253 = dma.done.wait [#allocation4], 128  }
   0xb   :  { %254 = vsyncadd [#allocation4], 4294967168 }
   0xc   :  { %255 = dma.done.wait [#allocation7], 256  }
   0xd   :  { %256 = vsyncadd [#allocation7], 4294967040  ;;  %v262_v0 = vmov 2   ;;  %v263_v1 = vmov 0   ;;  %v264_v2 = vmov 4   ;;  %v67_v3 = vld [vmem:[#allocation8] sm:$0xff]  ;;  %v65_v12 = vlaneseq }
   0xe   :  { %162 = vset.pattern.permute.xlu1 %v262_v0  ;;  %160 = vset.pattern.permute.xlu0 %v263_v1  ;;  %v265_v4 = vmov 3   ;;  %v266_v5 = vmov 1   ;;  %v267_v6 = vmov 5   ;;  %v268_v7 = vmov 6   ;;  %v61_v20 = vld [vmem:[#allocation3] sm:$0xff]  ;;  %v62_v21 = vld [vmem:[#allocation6] sm:$0xff] }
   0xf   :  { %164 = vset.pattern.permute.xlu2 %v264_v2  ;;  %79 = vperm.xlu1 %162, %v67_v3   ;;  %v269_v8 = vmov 7   ;;  %v66_v13 = vand.u32 127, %v65_v12  ;;  %v270_v17 = vmov 1.0   ;;  %v63_v24 = vsub.f32 %v61_v20, %v62_v21  ;;  %s133_s26 = sshll.u32 %s307_s3, 4  ;;  %s271_s29 = smov [#allocation9]   ;;  %s134_s26 = int_to_ptr.hbm [resolvable:$true] %s133_s26 }
  0x10   :  { %69 = vperm.xlu0 %160, %v67_v3   ;;  %89 = vperm.xlu2 %164, %v67_v3  }
  0x11   :  { %v64_v28 = vmul.f32 %v63_v24, %v63_v24 }
  0x17   :  { %163 = vset.pattern.permute.xlu1 %v265_v4 }
  0x18   :  { %161 = vset.pattern.permute.xlu0 %v266_v5  ;;  %84 = vperm.xlu1 %163, %v67_v3  }
  0x19   :  { %74 = vperm.xlu0 %161, %v67_v3   ;;  %165 = vset.pattern.permute.xlu2 %v267_v6 }
  0x1a   :  { %94 = vperm.xlu2 %165, %v67_v3  }
  0x20   :  { %166 = vset.pattern.permute.xlu1 %v268_v7 }
  0x21   :  { %168 = vset.pattern.permute.xlu0 %v269_v8  ;;  %99 = vperm.xlu1 %166, %v67_v3  }
  0x22   :  { %167 = vset.pattern.permute.xlu2 %v269_v8 }
  0x23   :  { %104 = vperm.xlu2 %167, %v67_v3  }
  0x6a   :  { %v90_v9 = vpop.permute.xlu2 %89 }
  0x6b   :  { %vm91_vm4 = vcmp.eq.s32.totalorder %v66_v13, %v90_v9 }
  0x74   :  { %v95_v14 = vpop.permute.xlu2 %94 }
  0x75   :  { %vm96_vm5 = vcmp.eq.s32.totalorder %v66_v13, %v95_v14 }
  0x7d   :  { %v105_v25 = vpop.permute.xlu2 %104 }
  0x7e   :  { %vm106_vm6 = vcmp.eq.s32.totalorder %v66_v13, %v105_v25 }
  0x81   :  { %v80_v10 = vpop.permute.xlu1 %79 }
  0x82   :  { %v70_v11 = vpop.permute.xlu0 %69  ;;  %vm81_vm2 = vcmp.eq.s32.totalorder %v66_v13, %v80_v10 }
  0x83   :  { %vm71_vm0 = vcmp.eq.s32.totalorder %v66_v13, %v70_v11 }
  0x84   :  { %v72_v18 = vsel %vm71_vm0, 10.0, %v270_v17 }
  0x8a   :  { %v85_v15 = vpop.permute.xlu1 %84 }
  0x8b   :  { %v75_v16 = vpop.permute.xlu0 %74  ;;  %vm86_vm3 = vcmp.eq.s32.totalorder %v66_v13, %v85_v15 }
  0x8c   :  { %vm76_vm1 = vcmp.eq.s32.totalorder %v66_v13, %v75_v16 }
  0x8d   :  { %v77_v19 = vsel %vm76_vm1, 10.0, %v72_v18 }
  0x8e   :  { %v82_v22 = vsel %vm81_vm2, 10.0, %v77_v19 }
  0x8f   :  { %v87_v23 = vsel %vm86_vm3, 10.0, %v82_v22 }
  0x90   :  { %v92_v26 = vsel %vm91_vm4, 10.0, %v87_v23 }
  0x91   :  { %v97_v29 = vsel %vm96_vm5, 10.0, %v92_v26 }
  0x93   :  { %v100_v27 = vpop.permute.xlu1 %99 }
  0x94   :  { %vm101_vm7 = vcmp.eq.s32.totalorder %v66_v13, %v100_v27 }
  0x95   :  { %v102_v30 = vsel %vm101_vm7, 10.0, %v97_v29 }
  0x96   :  { %v107_v31 = vsel %vm106_vm6, 10.0, %v102_v30 }
  0x97   :  { %v109_v32 = vmul.f32 %v107_v31, %v64_v28 }
  0x99   :  { %116 = vadd.xlane.f32.xlu0 %v109_v32 }
 0x10c   :  { %v117_v33 = vpop.xlane.xlu0 %116 }
 0x10d   :  { %v118_v34 = vrot.slane %v117_v33, 4 }
 0x10f   :  { %v119_v35 = vadd.f32 %v118_v34, %v117_v33 }
 0x111   :  { %v120_v36 = vrot.slane %v119_v35, 2 }
 0x113   :  { %v121_v37 = vadd.f32 %v120_v36, %v119_v35 }
 0x115   :  { %v122_v38 = vrot.slane %v121_v37, 1 }
 0x117   :  { %v123_v39 = vadd.f32 %v122_v38, %v121_v37 }
 0x119   :  { %145 = vpush %v123_v39 }
 0x14a   :  { %s146_s27 = spop %145 }
 0x14b   :  { %s125_s28 = smul.f32 0.0078125, %s146_s27 }
 0x14d   :  { %127 = sst [smem:[#allocation9]] %s125_s28 }
 0x14e   :  { %136 = dma.smem_to_hbm %s271_s29, 16, %s134_s26, [#allocation5]  }
 0x14f   :  { %257 = dma.done.wait [#allocation5], 16  }
 0x150   :  { %258 = vsyncadd [#allocation5], 4294967280 }
 0x151   :  { %141 = sfence }
 0x152   :  { %142 = vsyncpa [#allocation4], 1 }
 0x153   :  { %143 = vsyncpa [#allocation7], 1 }
 0x154   :  { %144 = vsyncpa [#allocation5], 1 }

</bundles_post_ra>
